<compile_context>
chip_gen: v5e
topology: v5e:2x2
jax: 0.10.0
libtpu: 0.0.40
codegen_flags: <defaults>
</compile_context>

<pallas_src>
import functools

import jax
import jax.numpy as jnp
from jax.experimental import pallas as pl
from jax.experimental.pallas import tpu as pltpu

HIDDEN = 16
INPUT = 2
OUT = 2
LANES = 128                       # lane-dense width for the packed slab / output
_HP = jax.lax.Precision.HIGHEST


def _lstm_fc_kernel(gx_ref, p_ref, out_ref, *, seq_len, batch):
    """Single-invocation LSTM recurrence + fused final Linear.

    gx_ref:  (T*B, 4*HIDDEN)  pre-projected inputs x@W_ih^T + b, gate order [i|f|o|g]
    p_ref:   (40, 128)        packed params:
                                rows  0:16, lanes 0:64  -> W_hh^T  (gate order [i|f|o|g])
                                rows 16:32, lanes 0:128 -> W_fc^T padded to 128 lanes
                                row  32,    lanes 0:128 -> b_fc   padded to 128 lanes
    out_ref: (B, 128)         lane-dense output slab; real data in lanes [:OUT]
    """
    # One static slice each — zero-cost views on the resident VMEM slab.
    whh = p_ref[0:HIDDEN, 0:4 * HIDDEN]                     # (16, 64)

    h = jnp.zeros((batch, HIDDEN), jnp.float32)
    c = jnp.zeros((batch, HIDDEN), jnp.float32)

    # T is a small static constant: fully unroll; h/c are plain loop carries
    # (no scratch round trips) and the per-step gx slice is a vld from VMEM.
    for t in range(seq_len):
        gates = (gx_ref[t * batch:(t + 1) * batch, :]
                 + jnp.dot(h, whh, preferred_element_type=jnp.float32))

        # Gate layout [i | f | o | g]: one sigmoid pass (48 lanes) + one tanh.
        sig = jax.nn.sigmoid(gates[:, :3 * HIDDEN])
        g_g = jnp.tanh(gates[:, 3 * HIDDEN:])

        i_g = sig[:, 0 * HIDDEN:1 * HIDDEN]
        f_g = sig[:, 1 * HIDDEN:2 * HIDDEN]
        o_g = sig[:, 2 * HIDDEN:3 * HIDDEN]

        c = f_g * c + i_g * g_g
        h = o_g * jnp.tanh(c)

    # Fused fc(h_T), lane-dense: (B,16) @ (16,128) + (1,128) -> full-lane store.
    wfc = p_ref[HIDDEN:2 * HIDDEN, :]                       # (16, 128)
    bfc = p_ref[2 * HIDDEN:2 * HIDDEN + 1, :]               # (1, 128)
    out_ref[...] = jnp.dot(h, wfc, preferred_element_type=jnp.float32) + bfc


def _permute_gates(w):
    """Reorder the trailing 4*HIDDEN gate axis from PyTorch [i|f|g|o] to [i|f|o|g]."""
    return jnp.concatenate(
        [w[..., 0:2 * HIDDEN],                 # i, f
         w[..., 3 * HIDDEN:4 * HIDDEN],        # o
         w[..., 2 * HIDDEN:3 * HIDDEN]],       # g
        axis=-1)


def pack_params(wih_t, whh_t, b, wfc_t, bfc):
    """One-time parameter packing (would live at module init in production).

    Returns (wih_p, b_p, param_slab):
      wih_p (INPUT, 4H), b_p (1, 4H): used by the wrapper-side input projection.
      param_slab (40, 128): single lane-dense f32 operand for the kernel.
    """
    wih_p = _permute_gates(wih_t)                           # (2, 64)
    whh_p = _permute_gates(whh_t)                           # (16, 64)
    b_p = _permute_gates(b)                                 # (1, 64)

    rows = 2 * HIDDEN + 8                                   # 40, sublane-aligned
    slab = jnp.zeros((rows, LANES), jnp.float32)
    slab = slab.at[0:HIDDEN, 0:4 * HIDDEN].set(whh_p)
    slab = slab.at[HIDDEN:2 * HIDDEN, 0:OUT].set(wfc_t)
    slab = slab.at[2 * HIDDEN, 0:OUT].set(bfc[0])
    return wih_p, b_p, slab


@jax.jit
def rnn_predictor_pallas(x, wih_p, b_p, param_slab):
    """x: (T, B, INPUT) float32 -> (B, OUT) float32."""
    T, B, _ = x.shape

    # Input projection hoisted off the serial chain entirely: one (T*B,2)@(2,64)
    # matmul in the wrapper (precision pinned), so the kernel ingests a
    # lane-reasonable (T*B, 64) slab instead of a last-dim-2 one.
    gx = jnp.dot(x.reshape(T * B, INPUT), wih_p, precision=_HP) + b_p

    vmem = lambda: pl.BlockSpec(memory_space=pltpu.MemorySpace.VMEM)

    out_pad = pl.pallas_call(
        functools.partial(_lstm_fc_kernel, seq_len=T, batch=B),
        out_shape=jax.ShapeDtypeStruct((B, LANES), jnp.float32),
        in_specs=[vmem(), vmem()],
        out_specs=vmem(),
        cost_estimate=pl.CostEstimate(
            flops=2 * T * B * HIDDEN * 4 * HIDDEN + 2 * B * HIDDEN * LANES,
            transcendentals=T * B * 5 * HIDDEN,
            bytes_accessed=4 * (T * B * 4 * HIDDEN + param_slab.size + B * LANES)),
    )(gx, param_slab)

    # Lane-dense kernel store; real output lives in the first OUT lanes.
    return out_pad[:, :OUT]


def rnn_predictor_ref(x, wih_t, whh_t, b, wfc_t, bfc):
    """Pure-JAX reference with PyTorch LSTM semantics, precision pinned."""
    B = x.shape[1]
    h0 = jnp.zeros((B, HIDDEN), jnp.float32)
    c0 = jnp.zeros((B, HIDDEN), jnp.float32)

    def step(carry, x_t):
        h, c = carry
        gates = (jnp.dot(x_t, wih_t, precision=_HP)
                 + jnp.dot(h, whh_t, precision=_HP) + b)
        i_g = jax.nn.sigmoid(gates[:, 0 * HIDDEN:1 * HIDDEN])
        f_g = jax.nn.sigmoid(gates[:, 1 * HIDDEN:2 * HIDDEN])
        g_g = jnp.tanh(gates[:, 2 * HIDDEN:3 * HIDDEN])
        o_g = jax.nn.sigmoid(gates[:, 3 * HIDDEN:4 * HIDDEN])
        c = f_g * c + i_g * g_g
        h = o_g * jnp.tanh(c)
        return (h, c), None

    (h, _), _ = jax.lax.scan(step, (h0, c0), x)
    return jnp.dot(h, wfc_t, precision=_HP) + bfc


def make_params(key):
    """Deterministic synthetic parameters matching nn.LSTM(2,16,1)+Linear(16,2)."""
    ks = jax.random.split(key, 6)
    scale = 1.0 / jnp.sqrt(HIDDEN).astype(jnp.float32)
    w_ih = jax.random.uniform(ks[0], (4 * HIDDEN, INPUT), jnp.float32, -scale, scale)
    w_hh = jax.random.uniform(ks[1], (4 * HIDDEN, HIDDEN), jnp.float32, -scale, scale)
    b_ih = jax.random.uniform(ks[2], (4 * HIDDEN,), jnp.float32, -scale, scale)
    b_hh = jax.random.uniform(ks[3], (4 * HIDDEN,), jnp.float32, -scale, scale)
    w_fc = jax.random.uniform(ks[4], (OUT, HIDDEN), jnp.float32, -scale, scale)
    b_fc = jax.random.uniform(ks[5], (OUT,), jnp.float32, -scale, scale)
    # Pre-transpose for row-major matmuls; fold the two LSTM biases together.
    return (w_ih.T,                              # (INPUT, 4H), gate order i,f,g,o
            w_hh.T,                              # (HIDDEN, 4H)
            (b_ih + b_hh).reshape(1, 4 * HIDDEN),
            w_fc.T,                              # (HIDDEN, OUT)
            b_fc.reshape(1, OUT))


if __name__ == "__main__":
    key = jax.random.PRNGKey(0)
    k_x, k_p = jax.random.split(key)

    T, B = 8, 8
    x = jax.random.normal(k_x, (T, B, INPUT), jnp.float32)   # (seq, batch, feat)
    params = make_params(k_p)

    packed = pack_params(*params)          # one-time packing (off the hot path)
    out = rnn_predictor_pallas(x, *packed)
    out = jax.block_until_ready(out)

    ref = rnn_predictor_ref(x, *params)
    assert out.shape == (B, OUT)
    assert jnp.allclose(out, ref, atol=1e-5, rtol=1e-5), "mismatch vs reference"

    print("KERNEL_OK")
</pallas_src>

<mosaic_0001>
module attributes {stable_mosaic.version = 11 : i64} {
  func.func @_lstm_fc_kernel(%arg0: memref<64x64xf32, #tpu.memory_space<vmem>>, %arg1: memref<40x128xf32, #tpu.memory_space<vmem>>, %arg2: memref<8x128xf32, #tpu.memory_space<vmem>>) attributes {dimension_semantics = [], scalar_prefetch = 0 : i64, scratch_operands = 0 : i64, tpu.core_type = #tpu.core_type<tc>} {
    %c0 = arith.constant 0 : index
    %c0_0 = arith.constant 0 : index
    %0 = vector.load %arg1[%c0, %c0_0] : memref<40x128xf32, #tpu.memory_space<vmem>>, vector<16x64xf32>
    %cst = arith.constant 0.000000e+00 : f32
    %1 = vector.broadcast %cst : f32 to vector<8x16xf32>
    %cst_1 = arith.constant 0.000000e+00 : f32
    %2 = vector.broadcast %cst_1 : f32 to vector<8x16xf32>
    %c0_2 = arith.constant 0 : index
    %c0_3 = arith.constant 0 : index
    %3 = vector.load %arg0[%c0_2, %c0_3] : memref<64x64xf32, #tpu.memory_space<vmem>>, vector<8x64xf32>
    %cst_4 = arith.constant dense<0.000000e+00> : vector<8x64xf32>
    %4 = tpu.matmul %1, %0, %cst_4 {dimension_numbers = #tpu.dot_dimension_numbers<[1], [0], [0], [1], [0, 0, 1, 1], [], []>} : vector<8x16xf32>, vector<16x64xf32>, vector<8x64xf32> -> vector<8x64xf32>
    %5 = arith.addf %3, %4 : vector<8x64xf32>
    %6 = vector.extract_strided_slice %5 {offsets = [0, 0], sizes = [8, 48], strides = [1, 1]} : vector<8x64xf32> to vector<8x48xf32>
    %7 = arith.negf %6 : vector<8x48xf32>
    %8 = math.exp %7 : vector<8x48xf32>
    %cst_5 = arith.constant 1.000000e+00 : f32
    %9 = vector.broadcast %cst_5 : f32 to vector<8x48xf32>
    %10 = arith.addf %9, %8 : vector<8x48xf32>
    %11 = arith.divf %9, %10 : vector<8x48xf32>
    %12 = vector.extract_strided_slice %5 {offsets = [0, 48], sizes = [8, 16], strides = [1, 1]} : vector<8x64xf32> to vector<8x16xf32>
    %13 = math.tanh %12 : vector<8x16xf32>
    %14 = vector.extract_strided_slice %11 {offsets = [0, 0], sizes = [8, 16], strides = [1, 1]} : vector<8x48xf32> to vector<8x16xf32>
    %15 = vector.extract_strided_slice %11 {offsets = [0, 16], sizes = [8, 16], strides = [1, 1]} : vector<8x48xf32> to vector<8x16xf32>
    %16 = vector.extract_strided_slice %11 {offsets = [0, 32], sizes = [8, 16], strides = [1, 1]} : vector<8x48xf32> to vector<8x16xf32>
    %17 = arith.mulf %15, %2 : vector<8x16xf32>
    %18 = arith.mulf %14, %13 : vector<8x16xf32>
    %19 = arith.addf %17, %18 : vector<8x16xf32>
    %20 = math.tanh %19 : vector<8x16xf32>
    %21 = arith.mulf %16, %20 : vector<8x16xf32>
    %c8 = arith.constant 8 : index
    %c0_6 = arith.constant 0 : index
    %22 = vector.load %arg0[%c8, %c0_6] : memref<64x64xf32, #tpu.memory_space<vmem>>, vector<8x64xf32>
    %cst_7 = arith.constant dense<0.000000e+00> : vector<8x64xf32>
    %23 = tpu.matmul %21, %0, %cst_7 {dimension_numbers = #tpu.dot_dimension_numbers<[1], [0], [0], [1], [0, 0, 1, 1], [], []>} : vector<8x16xf32>, vector<16x64xf32>, vector<8x64xf32> -> vector<8x64xf32>
    %24 = arith.addf %22, %23 : vector<8x64xf32>
    %25 = vector.extract_strided_slice %24 {offsets = [0, 0], sizes = [8, 48], strides = [1, 1]} : vector<8x64xf32> to vector<8x48xf32>
    %26 = arith.negf %25 : vector<8x48xf32>
    %27 = math.exp %26 : vector<8x48xf32>
    %cst_8 = arith.constant 1.000000e+00 : f32
    %28 = vector.broadcast %cst_8 : f32 to vector<8x48xf32>
    %29 = arith.addf %28, %27 : vector<8x48xf32>
    %30 = arith.divf %28, %29 : vector<8x48xf32>
    %31 = vector.extract_strided_slice %24 {offsets = [0, 48], sizes = [8, 16], strides = [1, 1]} : vector<8x64xf32> to vector<8x16xf32>
    %32 = math.tanh %31 : vector<8x16xf32>
    %33 = vector.extract_strided_slice %30 {offsets = [0, 0], sizes = [8, 16], strides = [1, 1]} : vector<8x48xf32> to vector<8x16xf32>
    %34 = vector.extract_strided_slice %30 {offsets = [0, 16], sizes = [8, 16], strides = [1, 1]} : vector<8x48xf32> to vector<8x16xf32>
    %35 = vector.extract_strided_slice %30 {offsets = [0, 32], sizes = [8, 16], strides = [1, 1]} : vector<8x48xf32> to vector<8x16xf32>
    %36 = arith.mulf %34, %19 : vector<8x16xf32>
    %37 = arith.mulf %33, %32 : vector<8x16xf32>
    %38 = arith.addf %36, %37 : vector<8x16xf32>
    %39 = math.tanh %38 : vector<8x16xf32>
    %40 = arith.mulf %35, %39 : vector<8x16xf32>
    %c16 = arith.constant 16 : index
    %c0_9 = arith.constant 0 : index
    %41 = vector.load %arg0[%c16, %c0_9] : memref<64x64xf32, #tpu.memory_space<vmem>>, vector<8x64xf32>
    %cst_10 = arith.constant dense<0.000000e+00> : vector<8x64xf32>
    %42 = tpu.matmul %40, %0, %cst_10 {dimension_numbers = #tpu.dot_dimension_numbers<[1], [0], [0], [1], [0, 0, 1, 1], [], []>} : vector<8x16xf32>, vector<16x64xf32>, vector<8x64xf32> -> vector<8x64xf32>
    %43 = arith.addf %41, %42 : vector<8x64xf32>
    %44 = vector.extract_strided_slice %43 {offsets = [0, 0], sizes = [8, 48], strides = [1, 1]} : vector<8x64xf32> to vector<8x48xf32>
    %45 = arith.negf %44 : vector<8x48xf32>
    %46 = math.exp %45 : vector<8x48xf32>
    %cst_11 = arith.constant 1.000000e+00 : f32
    %47 = vector.broadcast %cst_11 : f32 to vector<8x48xf32>
    %48 = arith.addf %47, %46 : vector<8x48xf32>
    %49 = arith.divf %47, %48 : vector<8x48xf32>
    %50 = vector.extract_strided_slice %43 {offsets = [0, 48], sizes = [8, 16], strides = [1, 1]} : vector<8x64xf32> to vector<8x16xf32>
    %51 = math.tanh %50 : vector<8x16xf32>
    %52 = vector.extract_strided_slice %49 {offsets = [0, 0], sizes = [8, 16], strides = [1, 1]} : vector<8x48xf32> to vector<8x16xf32>
    %53 = vector.extract_strided_slice %49 {offsets = [0, 16], sizes = [8, 16], strides = [1, 1]} : vector<8x48xf32> to vector<8x16xf32>
    %54 = vector.extract_strided_slice %49 {offsets = [0, 32], sizes = [8, 16], strides = [1, 1]} : vector<8x48xf32> to vector<8x16xf32>
    %55 = arith.mulf %53, %38 : vector<8x16xf32>
    %56 = arith.mulf %52, %51 : vector<8x16xf32>
    %57 = arith.addf %55, %56 : vector<8x16xf32>
    %58 = math.tanh %57 : vector<8x16xf32>
    %59 = arith.mulf %54, %58 : vector<8x16xf32>
    %c24 = arith.constant 24 : index
    %c0_12 = arith.constant 0 : index
    %60 = vector.load %arg0[%c24, %c0_12] : memref<64x64xf32, #tpu.memory_space<vmem>>, vector<8x64xf32>
    %cst_13 = arith.constant dense<0.000000e+00> : vector<8x64xf32>
    %61 = tpu.matmul %59, %0, %cst_13 {dimension_numbers = #tpu.dot_dimension_numbers<[1], [0], [0], [1], [0, 0, 1, 1], [], []>} : vector<8x16xf32>, vector<16x64xf32>, vector<8x64xf32> -> vector<8x64xf32>
    %62 = arith.addf %60, %61 : vector<8x64xf32>
    %63 = vector.extract_strided_slice %62 {offsets = [0, 0], sizes = [8, 48], strides = [1, 1]} : vector<8x64xf32> to vector<8x48xf32>
    %64 = arith.negf %63 : vector<8x48xf32>
    %65 = math.exp %64 : vector<8x48xf32>
    %cst_14 = arith.constant 1.000000e+00 : f32
    %66 = vector.broadcast %cst_14 : f32 to vector<8x48xf32>
    %67 = arith.addf %66, %65 : vector<8x48xf32>
    %68 = arith.divf %66, %67 : vector<8x48xf32>
    %69 = vector.extract_strided_slice %62 {offsets = [0, 48], sizes = [8, 16], strides = [1, 1]} : vector<8x64xf32> to vector<8x16xf32>
    %70 = math.tanh %69 : vector<8x16xf32>
    %71 = vector.extract_strided_slice %68 {offsets = [0, 0], sizes = [8, 16], strides = [1, 1]} : vector<8x48xf32> to vector<8x16xf32>
    %72 = vector.extract_strided_slice %68 {offsets = [0, 16], sizes = [8, 16], strides = [1, 1]} : vector<8x48xf32> to vector<8x16xf32>
    %73 = vector.extract_strided_slice %68 {offsets = [0, 32], sizes = [8, 16], strides = [1, 1]} : vector<8x48xf32> to vector<8x16xf32>
    %74 = arith.mulf %72, %57 : vector<8x16xf32>
    %75 = arith.mulf %71, %70 : vector<8x16xf32>
    %76 = arith.addf %74, %75 : vector<8x16xf32>
    %77 = math.tanh %76 : vector<8x16xf32>
    %78 = arith.mulf %73, %77 : vector<8x16xf32>
    %c32 = arith.constant 32 : index
    %c0_15 = arith.constant 0 : index
    %79 = vector.load %arg0[%c32, %c0_15] : memref<64x64xf32, #tpu.memory_space<vmem>>, vector<8x64xf32>
    %cst_16 = arith.constant dense<0.000000e+00> : vector<8x64xf32>
    %80 = tpu.matmul %78, %0, %cst_16 {dimension_numbers = #tpu.dot_dimension_numbers<[1], [0], [0], [1], [0, 0, 1, 1], [], []>} : vector<8x16xf32>, vector<16x64xf32>, vector<8x64xf32> -> vector<8x64xf32>
    %81 = arith.addf %79, %80 : vector<8x64xf32>
    %82 = vector.extract_strided_slice %81 {offsets = [0, 0], sizes = [8, 48], strides = [1, 1]} : vector<8x64xf32> to vector<8x48xf32>
    %83 = arith.negf %82 : vector<8x48xf32>
    %84 = math.exp %83 : vector<8x48xf32>
    %cst_17 = arith.constant 1.000000e+00 : f32
    %85 = vector.broadcast %cst_17 : f32 to vector<8x48xf32>
    %86 = arith.addf %85, %84 : vector<8x48xf32>
    %87 = arith.divf %85, %86 : vector<8x48xf32>
    %88 = vector.extract_strided_slice %81 {offsets = [0, 48], sizes = [8, 16], strides = [1, 1]} : vector<8x64xf32> to vector<8x16xf32>
    %89 = math.tanh %88 : vector<8x16xf32>
    %90 = vector.extract_strided_slice %87 {offsets = [0, 0], sizes = [8, 16], strides = [1, 1]} : vector<8x48xf32> to vector<8x16xf32>
    %91 = vector.extract_strided_slice %87 {offsets = [0, 16], sizes = [8, 16], strides = [1, 1]} : vector<8x48xf32> to vector<8x16xf32>
    %92 = vector.extract_strided_slice %87 {offsets = [0, 32], sizes = [8, 16], strides = [1, 1]} : vector<8x48xf32> to vector<8x16xf32>
    %93 = arith.mulf %91, %76 : vector<8x16xf32>
    %94 = arith.mulf %90, %89 : vector<8x16xf32>
    %95 = arith.addf %93, %94 : vector<8x16xf32>
    %96 = math.tanh %95 : vector<8x16xf32>
    %97 = arith.mulf %92, %96 : vector<8x16xf32>
    %c40 = arith.constant 40 : index
    %c0_18 = arith.constant 0 : index
    %98 = vector.load %arg0[%c40, %c0_18] : memref<64x64xf32, #tpu.memory_space<vmem>>, vector<8x64xf32>
    %cst_19 = arith.constant dense<0.000000e+00> : vector<8x64xf32>
    %99 = tpu.matmul %97, %0, %cst_19 {dimension_numbers = #tpu.dot_dimension_numbers<[1], [0], [0], [1], [0, 0, 1, 1], [], []>} : vector<8x16xf32>, vector<16x64xf32>, vector<8x64xf32> -> vector<8x64xf32>
    %100 = arith.addf %98, %99 : vector<8x64xf32>
    %101 = vector.extract_strided_slice %100 {offsets = [0, 0], sizes = [8, 48], strides = [1, 1]} : vector<8x64xf32> to vector<8x48xf32>
    %102 = arith.negf %101 : vector<8x48xf32>
    %103 = math.exp %102 : vector<8x48xf32>
    %cst_20 = arith.constant 1.000000e+00 : f32
    %104 = vector.broadcast %cst_20 : f32 to vector<8x48xf32>
    %105 = arith.addf %104, %103 : vector<8x48xf32>
    %106 = arith.divf %104, %105 : vector<8x48xf32>
    %107 = vector.extract_strided_slice %100 {offsets = [0, 48], sizes = [8, 16], strides = [1, 1]} : vector<8x64xf32> to vector<8x16xf32>
    %108 = math.tanh %107 : vector<8x16xf32>
    %109 = vector.extract_strided_slice %106 {offsets = [0, 0], sizes = [8, 16], strides = [1, 1]} : vector<8x48xf32> to vector<8x16xf32>
    %110 = vector.extract_strided_slice %106 {offsets = [0, 16], sizes = [8, 16], strides = [1, 1]} : vector<8x48xf32> to vector<8x16xf32>
    %111 = vector.extract_strided_slice %106 {offsets = [0, 32], sizes = [8, 16], strides = [1, 1]} : vector<8x48xf32> to vector<8x16xf32>
    %112 = arith.mulf %110, %95 : vector<8x16xf32>
    %113 = arith.mulf %109, %108 : vector<8x16xf32>
    %114 = arith.addf %112, %113 : vector<8x16xf32>
    %115 = math.tanh %114 : vector<8x16xf32>
    %116 = arith.mulf %111, %115 : vector<8x16xf32>
    %c48 = arith.constant 48 : index
    %c0_21 = arith.constant 0 : index
    %117 = vector.load %arg0[%c48, %c0_21] : memref<64x64xf32, #tpu.memory_space<vmem>>, vector<8x64xf32>
    %cst_22 = arith.constant dense<0.000000e+00> : vector<8x64xf32>
    %118 = tpu.matmul %116, %0, %cst_22 {dimension_numbers = #tpu.dot_dimension_numbers<[1], [0], [0], [1], [0, 0, 1, 1], [], []>} : vector<8x16xf32>, vector<16x64xf32>, vector<8x64xf32> -> vector<8x64xf32>
    %119 = arith.addf %117, %118 : vector<8x64xf32>
    %120 = vector.extract_strided_slice %119 {offsets = [0, 0], sizes = [8, 48], strides = [1, 1]} : vector<8x64xf32> to vector<8x48xf32>
    %121 = arith.negf %120 : vector<8x48xf32>
    %122 = math.exp %121 : vector<8x48xf32>
    %cst_23 = arith.constant 1.000000e+00 : f32
    %123 = vector.broadcast %cst_23 : f32 to vector<8x48xf32>
    %124 = arith.addf %123, %122 : vector<8x48xf32>
    %125 = arith.divf %123, %124 : vector<8x48xf32>
    %126 = vector.extract_strided_slice %119 {offsets = [0, 48], sizes = [8, 16], strides = [1, 1]} : vector<8x64xf32> to vector<8x16xf32>
    %127 = math.tanh %126 : vector<8x16xf32>
    %128 = vector.extract_strided_slice %125 {offsets = [0, 0], sizes = [8, 16], strides = [1, 1]} : vector<8x48xf32> to vector<8x16xf32>
    %129 = vector.extract_strided_slice %125 {offsets = [0, 16], sizes = [8, 16], strides = [1, 1]} : vector<8x48xf32> to vector<8x16xf32>
    %130 = vector.extract_strided_slice %125 {offsets = [0, 32], sizes = [8, 16], strides = [1, 1]} : vector<8x48xf32> to vector<8x16xf32>
    %131 = arith.mulf %129, %114 : vector<8x16xf32>
    %132 = arith.mulf %128, %127 : vector<8x16xf32>
    %133 = arith.addf %131, %132 : vector<8x16xf32>
    %134 = math.tanh %133 : vector<8x16xf32>
    %135 = arith.mulf %130, %134 : vector<8x16xf32>
    %c56 = arith.constant 56 : index
    %c0_24 = arith.constant 0 : index
    %136 = vector.load %arg0[%c56, %c0_24] : memref<64x64xf32, #tpu.memory_space<vmem>>, vector<8x64xf32>
    %cst_25 = arith.constant dense<0.000000e+00> : vector<8x64xf32>
    %137 = tpu.matmul %135, %0, %cst_25 {dimension_numbers = #tpu.dot_dimension_numbers<[1], [0], [0], [1], [0, 0, 1, 1], [], []>} : vector<8x16xf32>, vector<16x64xf32>, vector<8x64xf32> -> vector<8x64xf32>
    %138 = arith.addf %136, %137 : vector<8x64xf32>
    %139 = vector.extract_strided_slice %138 {offsets = [0, 0], sizes = [8, 48], strides = [1, 1]} : vector<8x64xf32> to vector<8x48xf32>
    %140 = arith.negf %139 : vector<8x48xf32>
    %141 = math.exp %140 : vector<8x48xf32>
    %cst_26 = arith.constant 1.000000e+00 : f32
    %142 = vector.broadcast %cst_26 : f32 to vector<8x48xf32>
    %143 = arith.addf %142, %141 : vector<8x48xf32>
    %144 = arith.divf %142, %143 : vector<8x48xf32>
    %145 = vector.extract_strided_slice %138 {offsets = [0, 48], sizes = [8, 16], strides = [1, 1]} : vector<8x64xf32> to vector<8x16xf32>
    %146 = math.tanh %145 : vector<8x16xf32>
    %147 = vector.extract_strided_slice %144 {offsets = [0, 0], sizes = [8, 16], strides = [1, 1]} : vector<8x48xf32> to vector<8x16xf32>
    %148 = vector.extract_strided_slice %144 {offsets = [0, 16], sizes = [8, 16], strides = [1, 1]} : vector<8x48xf32> to vector<8x16xf32>
    %149 = vector.extract_strided_slice %144 {offsets = [0, 32], sizes = [8, 16], strides = [1, 1]} : vector<8x48xf32> to vector<8x16xf32>
    %150 = arith.mulf %148, %133 : vector<8x16xf32>
    %151 = arith.mulf %147, %146 : vector<8x16xf32>
    %152 = arith.addf %150, %151 : vector<8x16xf32>
    %153 = math.tanh %152 : vector<8x16xf32>
    %154 = arith.mulf %149, %153 : vector<8x16xf32>
    %c16_27 = arith.constant 16 : index
    %c0_28 = arith.constant 0 : index
    %155 = vector.load %arg1[%c16_27, %c0_28] : memref<40x128xf32, #tpu.memory_space<vmem>>, vector<16x128xf32>
    %c32_29 = arith.constant 32 : index
    %c0_30 = arith.constant 0 : index
    %156 = vector.load %arg1[%c32_29, %c0_30] : memref<40x128xf32, #tpu.memory_space<vmem>>, vector<1x128xf32>
    %cst_31 = arith.constant dense<0.000000e+00> : vector<8x128xf32>
    %157 = tpu.matmul %154, %155, %cst_31 {dimension_numbers = #tpu.dot_dimension_numbers<[1], [0], [0], [1], [0, 0, 1, 1], [], []>} : vector<8x16xf32>, vector<16x128xf32>, vector<8x128xf32> -> vector<8x128xf32>
    %158 = vector.broadcast %156 : vector<1x128xf32> to vector<8x128xf32>
    %159 = arith.addf %157, %158 : vector<8x128xf32>
    %c0_32 = arith.constant 0 : index
    %c0_33 = arith.constant 0 : index
    %160 = vector.load %arg2[%c0_32, %c0_33] : memref<8x128xf32, #tpu.memory_space<vmem>>, vector<8x128xf32>
    tpu.vector_store %arg2[%c0_32, %c0_33], %159 {strides = array<i32>} : memref<8x128xf32, #tpu.memory_space<vmem>>, vector<8x128xf32>,
    return
  }
}

</mosaic_0001>

<bundles_post_ra>
// kernel: rnn_predictor_pallas.1
= control target key start
LH: loop header
LB: loop body
LE: loop exit
PB: predicated region body
PF: predicated region fallthrough
CT: control target
= control target key end

     0   :  { %v643_v2 = vmov 0.0   ;;  %s644_s15 = smov 80   ;;  %s645_s16 = smov 16   ;;  %vm14_vm4 = vcmask 130048   ;;  %s744_s1 = inlined_call_operand.vmem [shape: f32[40,128], index: 1, kind: input, shape index: {}]   ;;  %s745_s0 = inlined_call_operand.vmem [shape: f32[64,64], index: 0, kind: input, shape index: {}]   ;;  %s746_s2 = inlined_call_operand.vmem [shape: f32[8,128], index: 2, kind: output, shape index: {}]  }
   0x1   :  { %v12_v0 = vld [vmem:[%s744_s1 + $0x8] sm:$0xff]  ;;  %v11_v1 = vld [vmem:[%s744_s1] sm:$0xff]  ;;  %s646_s17 = smov 96   ;;  %v140_v55 = vld [vmem:[%s745_s0 + $0x10] sm:$0xff] }
   0x2   :  { %32 = vmatpush.msra.mxu0 %v12_v0  ;;  %96 = vmatpush.msra.mxu1 %v12_v0  ;;  %v13_v3 = vld [vmem:[%s745_s0] sm:$0xff]  ;;  %v76_v29 = vld [vmem:[%s745_s0 + $0x8] sm:$0xff] }
   0x3   :  { %160 = vmatpush.msra.mxu2 %v12_v0  ;;  %224 = vmatpush.msra.mxu3 %v12_v0 }
   0x4   :  { %33 = vmatpush.msra.mxu0 %v11_v1  ;;  %97 = vmatpush.msra.mxu1 %v11_v1 }
   0x5   :  { %34 = vmatmul.f32.vlgmr.msra.gmra.mxu0 %v643_v2  ;;  %161 = vmatpush.msra.mxu2 %v11_v1 }
   0x6   :  { %225 = vmatpush.msra.mxu3 %v11_v1  ;;  %288 = vmatpush.msrb.mxu0 %v12_v0 }
   0x7   :  { %352 = vmatpush.msrb.mxu1 %v12_v0  ;;  %416 = vmatpush.msrb.mxu2 %v12_v0 }
   0x8   :  { %289 = vmatpush.msrb.mxu0 %v11_v1  ;;  %480 = vmatpush.msrb.mxu3 %v12_v0 }
   0x9   :  { %353 = vmatpush.msrb.mxu1 %v11_v1  ;;  %417 = vmatpush.msrb.mxu2 %v11_v1 }
   0xa   :  { %481 = vmatpush.msrb.mxu3 %v11_v1 }
  0x82   :  { %v35_v4 = vpop.f32.mrf.mxu0 }
  0x83   :  { %v38_v5 = vadd.f32 %v35_v4, %v13_v3 }
  0x85   :  { %579 = vtanh.f32 %v38_v5  ;;  %v558_v7 = vmul.f32 -1.442695, %v38_v5 }
  0x87   :  { %581 = vpow2.f32 %v558_v7 }
  0x8b   :  { %v580_v6 = vpop.eup %579 }
  0x8c   :  { %61 = vrot.lane.b32.xlu0 %v580_v6, %s644_s15 }
  0x8d   :  { %v582_v8 = vpop.eup %581 }
  0x8e   :  { %v42_v9 = vadd.f32 1.0, %v582_v8 }
  0x90   :  { %583 = vrcp.f32 %v42_v9  ;;  %v54_v15 = vand.u32 2147483648, %v42_v9  ;;  %vm48_vm1 = vweird.f32 %v42_v9  ;;  %v52_v16 = vand.u32 2147483647, %v42_v9 }
  0x92   :  { %v55_v18 = vor.u32 1.1754944e-38, %v54_v15  ;;  %vm53_vm3 = vcmp.eq.f32.partialorder %v52_v16, 8.507059e+37 }
  0x96   :  { %v584_v10 = vpop.eup %583 }
  0x97   :  { %v44_v11 = vmul.f32 %v584_v10, %v42_v9  ;;  %vm49_vm0 = vweird.f32 %v584_v10 }
  0x98   :  { %vm50_vm2 = vmor %vm48_vm1, %vm49_vm0 }
  0x99   :  { %v45_v12 = vsub.f32 1.0, %v44_v11 }
  0x9b   :  { %v46_v13 = vmul.f32 %v584_v10, %v45_v12 }
  0x9d   :  { %v47_v14 = vadd.f32 %v584_v10, %v46_v13 }
  0x9f   :  { %v51_v17 = vsel %vm50_vm2, %v584_v10, %v47_v14 }
  0xa0   :  { %v56_v20 = vsel %vm53_vm3, %v55_v18, %v51_v17  ;;  %v204_v17 = vld [vmem:[%s745_s0 + $0x18] sm:$0xff] }
  0xa1   :  { %v59_v22 = vmul.f32 0.0, %v56_v20 }
  0xfe   :  { %v62_v19 = vpop.permute.xlu0 %61 }
  0xff   :  { %v64_v21 = vmul.f32 %v62_v19, %v56_v20 }
 0x101   :  { %66 = vrot.lane.b32.xlu0 %v64_v21, %s645_s16 }
 0x173   :  { %v67_v23 = vpop.permute.xlu0 %66 }
 0x174   :  { %v69_v24 = vadd.f32 %v67_v23, %v59_v22 }
 0x176   :  { %585 = vtanh.f32 %v69_v24 }
 0x17c   :  { %v586_v25 = vpop.eup %585 }
 0x17d   :  { %72 = vrot.lane.b32.xlu1 %v586_v25, %s645_s16 }
 0x1ef   :  { %v73_v26 = vpop.permute.xlu1 %72 }
 0x1f0   :  { %v75_v27 = vmul.f32 %v73_v26, %v56_v20 }
 0x1f2   :  { %78 = vrot.lane.b32.xlu1 %v75_v27, %s646_s17 }
 0x264   :  { %v79_v28 = vpop.permute.xlu1 %78 }
 0x265   :  { %559 = vmatmul.msk.f32.vlgmr.msra.gmra.mxu1 %vm14_vm4, %v79_v28 }
 0x2e2   :  { %v99_v30 = vpop.f32.mrf.mxu1 }
 0x2e3   :  { %v102_v31 = vadd.f32 %v99_v30, %v76_v29 }
 0x2e5   :  { %587 = vtanh.f32 %v102_v31  ;;  %v560_v33 = vmul.f32 -1.442695, %v102_v31 }
 0x2e7   :  { %589 = vpow2.f32 %v560_v33 }
 0x2eb   :  { %v588_v32 = vpop.eup %587 }
 0x2ec   :  { %125 = vrot.lane.b32.xlu2 %v588_v32, %s644_s15 }
 0x2ed   :  { %v590_v34 = vpop.eup %589 }
 0x2ee   :  { %v106_v35 = vadd.f32 1.0, %v590_v34 }
 0x2f0   :  { %591 = vrcp.f32 %v106_v35  ;;  %v118_v41 = vand.u32 2147483648, %v106_v35  ;;  %vm112_vm6 = vweird.f32 %v106_v35  ;;  %v116_v42 = vand.u32 2147483647, %v106_v35 }
 0x2f2   :  { %v119_v44 = vor.u32 1.1754944e-38, %v118_v41  ;;  %vm117_vm8 = vcmp.eq.f32.partialorder %v116_v42, 8.507059e+37 }
 0x2f6   :  { %v592_v36 = vpop.eup %591 }
 0x2f7   :  { %v108_v37 = vmul.f32 %v592_v36, %v106_v35  ;;  %vm113_vm5 = vweird.f32 %v592_v36 }
 0x2f8   :  { %vm114_vm7 = vmor %vm112_vm6, %vm113_vm5 }
 0x2f9   :  { %v109_v38 = vsub.f32 1.0, %v108_v37 }
 0x2fb   :  { %v110_v39 = vmul.f32 %v592_v36, %v109_v38 }
 0x2fd   :  { %v111_v40 = vadd.f32 %v592_v36, %v110_v39 }
 0x2ff   :  { %v115_v43 = vsel %vm114_vm7, %v592_v36, %v111_v40 }
 0x300   :  { %v120_v46 = vsel %vm117_vm8, %v119_v44, %v115_v43  ;;  %v268_v43 = vld [vmem:[%s745_s0 + $0x20] sm:$0xff] }
 0x301   :  { %v123_v48 = vmul.f32 %v120_v46, %v69_v24 }
 0x346   :  { %v126_v45 = vpop.permute.xlu2 %125 }
 0x347   :  { %v128_v47 = vmul.f32 %v126_v45, %v120_v46 }
 0x349   :  { %130 = vrot.lane.b32.xlu2 %v128_v47, %s645_s16 }
 0x3a3   :  { %v131_v49 = vpop.permute.xlu2 %130 }
 0x3a4   :  { %v133_v50 = vadd.f32 %v131_v49, %v123_v48 }
 0x3a6   :  { %593 = vtanh.f32 %v133_v50 }
 0x3ac   :  { %v594_v51 = vpop.eup %593 }
 0x3ad   :  { %136 = vrot.lane.b32.xlu0 %v594_v51, %s645_s16 }
 0x41f   :  { %v137_v52 = vpop.permute.xlu0 %136 }
 0x420   :  { %v139_v53 = vmul.f32 %v137_v52, %v120_v46 }
 0x422   :  { %142 = vrot.lane.b32.xlu1 %v139_v53, %s646_s17 }
 0x494   :  { %v143_v54 = vpop.permute.xlu1 %142 }
 0x495   :  { %561 = vmatmul.msk.f32.vlgmr.msra.gmra.mxu2 %vm14_vm4, %v143_v54 }
 0x518   :  { %v163_v56 = vpop.f32.mrf.mxu2 }
 0x519   :  { %v166_v57 = vadd.f32 %v163_v56, %v140_v55 }
 0x51b   :  { %595 = vtanh.f32 %v166_v57  ;;  %v562_v59 = vmul.f32 -1.442695, %v166_v57 }
 0x51d   :  { %597 = vpow2.f32 %v562_v59 }
 0x521   :  { %v596_v58 = vpop.eup %595 }
 0x522   :  { %189 = vrot.lane.b32.xlu2 %v596_v58, %s644_s15 }
 0x523   :  { %v598_v60 = vpop.eup %597 }
 0x524   :  { %v170_v61 = vadd.f32 1.0, %v598_v60 }
 0x526   :  { %599 = vrcp.f32 %v170_v61  ;;  %v182_v3 = vand.u32 2147483648, %v170_v61  ;;  %vm176_vm10 = vweird.f32 %v170_v61  ;;  %v180_v4 = vand.u32 2147483647, %v170_v61 }
 0x528   :  { %v183_v6 = vor.u32 1.1754944e-38, %v182_v3  ;;  %vm181_vm12 = vcmp.eq.f32.partialorder %v180_v4, 8.507059e+37 }
 0x52c   :  { %v600_v62 = vpop.eup %599 }
 0x52d   :  { %v172_v63 = vmul.f32 %v600_v62, %v170_v61  ;;  %vm177_vm9 = vweird.f32 %v600_v62 }
 0x52e   :  { %vm178_vm11 = vmor %vm176_vm10, %vm177_vm9 }
 0x52f   :  { %v173_v0 = vsub.f32 1.0, %v172_v63 }
 0x531   :  { %v174_v1 = vmul.f32 %v600_v62, %v173_v0 }
 0x533   :  { %v175_v2 = vadd.f32 %v600_v62, %v174_v1 }
 0x535   :  { %v179_v5 = vsel %vm178_vm11, %v600_v62, %v175_v2 }
 0x536   :  { %v184_v8 = vsel %vm181_vm12, %v183_v6, %v179_v5  ;;  %v332_v5 = vld [vmem:[%s745_s0 + $0x28] sm:$0xff] }
 0x537   :  { %v187_v10 = vmul.f32 %v184_v8, %v133_v50 }
 0x57c   :  { %v190_v7 = vpop.permute.xlu2 %189 }
 0x57d   :  { %v192_v9 = vmul.f32 %v190_v7, %v184_v8 }
 0x57f   :  { %194 = vrot.lane.b32.xlu0 %v192_v9, %s645_s16 }
 0x5f1   :  { %v195_v11 = vpop.permute.xlu0 %194 }
 0x5f2   :  { %v197_v12 = vadd.f32 %v195_v11, %v187_v10 }
 0x5f4   :  { %601 = vtanh.f32 %v197_v12 }
 0x5fa   :  { %v602_v13 = vpop.eup %601 }
 0x5fb   :  { %200 = vrot.lane.b32.xlu1 %v602_v13, %s645_s16 }
 0x66d   :  { %v201_v14 = vpop.permute.xlu1 %200 }
 0x66e   :  { %v203_v15 = vmul.f32 %v201_v14, %v184_v8 }
 0x670   :  { %206 = vrot.lane.b32.xlu2 %v203_v15, %s646_s17 }
 0x6ca   :  { %v207_v16 = vpop.permute.xlu2 %206 }
 0x6cb   :  { %563 = vmatmul.msk.f32.vlgmr.msra.gmra.mxu3 %vm14_vm4, %v207_v16 }
 0x74e   :  { %v227_v18 = vpop.f32.mrf.mxu3 }
 0x74f   :  { %v230_v19 = vadd.f32 %v227_v18, %v204_v17 }
 0x751   :  { %603 = vtanh.f32 %v230_v19  ;;  %v564_v21 = vmul.f32 -1.442695, %v230_v19 }
 0x753   :  { %605 = vpow2.f32 %v564_v21 }
 0x757   :  { %v604_v20 = vpop.eup %603 }
 0x758   :  { %253 = vrot.lane.b32.xlu0 %v604_v20, %s644_s15 }
 0x759   :  { %v606_v22 = vpop.eup %605 }
 0x75a   :  { %v234_v23 = vadd.f32 1.0, %v606_v22 }
 0x75c   :  { %607 = vrcp.f32 %v234_v23  ;;  %v246_v29 = vand.u32 2147483648, %v234_v23  ;;  %vm240_vm14 = vweird.f32 %v234_v23  ;;  %v244_v30 = vand.u32 2147483647, %v234_v23 }
 0x75e   :  { %v247_v32 = vor.u32 1.1754944e-38, %v246_v29  ;;  %vm245_vm0 = vcmp.eq.f32.partialorder %v244_v30, 8.507059e+37 }
 0x762   :  { %v608_v24 = vpop.eup %607 }
 0x763   :  { %v236_v25 = vmul.f32 %v608_v24, %v234_v23  ;;  %vm241_vm13 = vweird.f32 %v608_v24 }
 0x764   :  { %vm242_vm15 = vmor %vm240_vm14, %vm241_vm13 }
 0x765   :  { %v237_v26 = vsub.f32 1.0, %v236_v25 }
 0x767   :  { %v238_v27 = vmul.f32 %v608_v24, %v237_v26 }
 0x769   :  { %v239_v28 = vadd.f32 %v608_v24, %v238_v27 }
 0x76b   :  { %v243_v31 = vsel %vm242_vm15, %v608_v24, %v239_v28 }
 0x76c   :  { %v248_v34 = vsel %vm245_vm0, %v247_v32, %v243_v31  ;;  %v396_v31 = vld [vmem:[%s745_s0 + $0x30] sm:$0xff] }
 0x76d   :  { %v251_v36 = vmul.f32 %v248_v34, %v197_v12 }
 0x7ca   :  { %v254_v33 = vpop.permute.xlu0 %253 }
 0x7cb   :  { %v256_v35 = vmul.f32 %v254_v33, %v248_v34 }
 0x7cd   :  { %258 = vrot.lane.b32.xlu1 %v256_v35, %s645_s16 }
 0x83f   :  { %v259_v37 = vpop.permute.xlu1 %258 }
 0x840   :  { %v261_v38 = vadd.f32 %v259_v37, %v251_v36 }
 0x842   :  { %609 = vtanh.f32 %v261_v38 }
 0x848   :  { %v610_v39 = vpop.eup %609 }
 0x849   :  { %264 = vrot.lane.b32.xlu2 %v610_v39, %s645_s16 }
 0x8a3   :  { %v265_v40 = vpop.permute.xlu2 %264 }
 0x8a4   :  { %v267_v41 = vmul.f32 %v265_v40, %v248_v34 }
 0x8a6   :  { %270 = vrot.lane.b32.xlu0 %v267_v41, %s646_s17 }
 0x918   :  { %v271_v42 = vpop.permute.xlu0 %270 }
 0x919   :  { %565 = vmatmul.msk.f32.vlgmr.msrb.gmra.mxu0 %vm14_vm4, %v271_v42 }
 0x996   :  { %v291_v44 = vpop.f32.mrf.mxu0 }
 0x997   :  { %v294_v45 = vadd.f32 %v291_v44, %v268_v43 }
 0x999   :  { %611 = vtanh.f32 %v294_v45  ;;  %v566_v47 = vmul.f32 -1.442695, %v294_v45 }
 0x99b   :  { %613 = vpow2.f32 %v566_v47 }
 0x99f   :  { %v612_v46 = vpop.eup %611 }
 0x9a0   :  { %317 = vrot.lane.b32.xlu1 %v612_v46, %s644_s15 }
 0x9a1   :  { %v614_v48 = vpop.eup %613 }
 0x9a2   :  { %v298_v49 = vadd.f32 1.0, %v614_v48 }
 0x9a4   :  { %615 = vrcp.f32 %v298_v49  ;;  %v310_v55 = vand.u32 2147483648, %v298_v49  ;;  %vm304_vm2 = vweird.f32 %v298_v49  ;;  %v308_v56 = vand.u32 2147483647, %v298_v49 }
 0x9a6   :  { %v311_v58 = vor.u32 1.1754944e-38, %v310_v55  ;;  %vm309_vm5 = vcmp.eq.f32.partialorder %v308_v56, 8.507059e+37 }
 0x9aa   :  { %v616_v50 = vpop.eup %615 }
 0x9ab   :  { %v300_v51 = vmul.f32 %v616_v50, %v298_v49  ;;  %vm305_vm1 = vweird.f32 %v616_v50 }
 0x9ac   :  { %vm306_vm3 = vmor %vm304_vm2, %vm305_vm1 }
 0x9ad   :  { %v301_v52 = vsub.f32 1.0, %v300_v51 }
 0x9af   :  { %v302_v53 = vmul.f32 %v616_v50, %v301_v52 }
 0x9b1   :  { %v303_v54 = vadd.f32 %v616_v50, %v302_v53 }
 0x9b3   :  { %v307_v57 = vsel %vm306_vm3, %v616_v50, %v303_v54 }
 0x9b4   :  { %v312_v60 = vsel %vm309_vm5, %v311_v58, %v307_v57  ;;  %v460_v57 = vld [vmem:[%s745_s0 + $0x38] sm:$0xff] }
 0x9b5   :  { %v315_v62 = vmul.f32 %v312_v60, %v261_v38 }
 0xa12   :  { %v318_v59 = vpop.permute.xlu1 %317 }
 0xa13   :  { %v320_v61 = vmul.f32 %v318_v59, %v312_v60 }
 0xa15   :  { %322 = vrot.lane.b32.xlu2 %v320_v61, %s645_s16 }
 0xa6f   :  { %v323_v63 = vpop.permute.xlu2 %322 }
 0xa70   :  { %v325_v0 = vadd.f32 %v323_v63, %v315_v62 }
 0xa72   :  { %617 = vtanh.f32 %v325_v0 }
 0xa78   :  { %v618_v1 = vpop.eup %617 }
 0xa79   :  { %328 = vrot.lane.b32.xlu0 %v618_v1, %s645_s16 }
 0xaeb   :  { %v329_v2 = vpop.permute.xlu0 %328 }
 0xaec   :  { %v331_v3 = vmul.f32 %v329_v2, %v312_v60 }
 0xaee   :  { %334 = vrot.lane.b32.xlu1 %v331_v3, %s646_s17 }
 0xb60   :  { %v335_v4 = vpop.permute.xlu1 %334 }
 0xb61   :  { %567 = vmatmul.msk.f32.vlgmr.msrb.gmra.mxu1 %vm14_vm4, %v335_v4 }
 0xbde   :  { %v355_v6 = vpop.f32.mrf.mxu1 }
 0xbdf   :  { %v358_v7 = vadd.f32 %v355_v6, %v332_v5 }
 0xbe1   :  { %619 = vtanh.f32 %v358_v7  ;;  %v568_v9 = vmul.f32 -1.442695, %v358_v7 }
 0xbe3   :  { %621 = vpow2.f32 %v568_v9 }
 0xbe7   :  { %v620_v8 = vpop.eup %619 }
 0xbe8   :  { %381 = vrot.lane.b32.xlu2 %v620_v8, %s644_s15 }
 0xbe9   :  { %v622_v10 = vpop.eup %621 }
 0xbea   :  { %v362_v11 = vadd.f32 1.0, %v622_v10 }
 0xbec   :  { %623 = vrcp.f32 %v362_v11  ;;  %v374_v17 = vand.u32 2147483648, %v362_v11  ;;  %vm368_vm7 = vweird.f32 %v362_v11  ;;  %v372_v18 = vand.u32 2147483647, %v362_v11 }
 0xbee   :  { %v375_v20 = vor.u32 1.1754944e-38, %v374_v17  ;;  %vm373_vm9 = vcmp.eq.f32.partialorder %v372_v18, 8.507059e+37  ;;  %v524_v17 = vld [vmem:[%s744_s1 + $0x10] sm:$0xff] }
 0xbf2   :  { %v624_v12 = vpop.eup %623 }
 0xbf3   :  { %v364_v13 = vmul.f32 %v624_v12, %v362_v11  ;;  %vm369_vm6 = vweird.f32 %v624_v12 }
 0xbf4   :  { %vm370_vm8 = vmor %vm368_vm7, %vm369_vm6 }
 0xbf5   :  { %v365_v14 = vsub.f32 1.0, %v364_v13 }
 0xbf7   :  { %v366_v15 = vmul.f32 %v624_v12, %v365_v14 }
 0xbf9   :  { %v367_v16 = vadd.f32 %v624_v12, %v366_v15 }
 0xbfb   :  { %v371_v19 = vsel %vm370_vm8, %v624_v12, %v367_v16  ;;  %v525_v16 = vld [vmem:[%s744_s1 + $0x18] sm:$0xff] }
 0xbfc   :  { %v376_v22 = vsel %vm373_vm9, %v375_v20, %v371_v19  ;;  %547 = vmatpush.msra.mxu0 %v525_v16 }
 0xbfd   :  { %v379_v24 = vmul.f32 %v376_v22, %v325_v0 }
 0xbfe   :  { %548 = vmatpush.msra.mxu0 %v524_v17 }
 0xc42   :  { %v382_v21 = vpop.permute.xlu2 %381 }
 0xc43   :  { %v384_v23 = vmul.f32 %v382_v21, %v376_v22  ;;  %v578_v21 = vld [vmem:[%s744_s1 + $0x20] ss:$0 sm:$0xff] }
 0xc45   :  { %386 = vrot.lane.b32.xlu0 %v384_v23, %s645_s16 }
 0xcb7   :  { %v387_v25 = vpop.permute.xlu0 %386 }
 0xcb8   :  { %v389_v26 = vadd.f32 %v387_v25, %v379_v24 }
 0xcba   :  { %625 = vtanh.f32 %v389_v26 }
 0xcc0   :  { %v626_v27 = vpop.eup %625 }
 0xcc1   :  { %392 = vrot.lane.b32.xlu1 %v626_v27, %s645_s16 }
 0xd33   :  { %v393_v28 = vpop.permute.xlu1 %392 }
 0xd34   :  { %v395_v29 = vmul.f32 %v393_v28, %v376_v22 }
 0xd36   :  { %398 = vrot.lane.b32.xlu2 %v395_v29, %s646_s17 }
 0xd90   :  { %v399_v30 = vpop.permute.xlu2 %398 }
 0xd91   :  { %569 = vmatmul.msk.f32.vlgmr.msrb.gmra.mxu2 %vm14_vm4, %v399_v30 }
 0xe14   :  { %v419_v32 = vpop.f32.mrf.mxu2 }
 0xe15   :  { %v422_v33 = vadd.f32 %v419_v32, %v396_v31 }
 0xe17   :  { %627 = vtanh.f32 %v422_v33  ;;  %v570_v35 = vmul.f32 -1.442695, %v422_v33 }
 0xe19   :  { %629 = vpow2.f32 %v570_v35 }
 0xe1d   :  { %v628_v34 = vpop.eup %627 }
 0xe1e   :  { %445 = vrot.lane.b32.xlu0 %v628_v34, %s644_s15 }
 0xe1f   :  { %v630_v36 = vpop.eup %629 }
 0xe20   :  { %v426_v37 = vadd.f32 1.0, %v630_v36 }
 0xe22   :  { %631 = vrcp.f32 %v426_v37  ;;  %v438_v43 = vand.u32 2147483648, %v426_v37  ;;  %vm432_vm11 = vweird.f32 %v426_v37  ;;  %v436_v44 = vand.u32 2147483647, %v426_v37 }
 0xe24   :  { %v439_v46 = vor.u32 1.1754944e-38, %v438_v43  ;;  %vm437_vm13 = vcmp.eq.f32.partialorder %v436_v44, 8.507059e+37 }
 0xe28   :  { %v632_v38 = vpop.eup %631 }
 0xe29   :  { %v428_v39 = vmul.f32 %v632_v38, %v426_v37  ;;  %vm433_vm10 = vweird.f32 %v632_v38 }
 0xe2a   :  { %vm434_vm12 = vmor %vm432_vm11, %vm433_vm10 }
 0xe2b   :  { %v429_v40 = vsub.f32 1.0, %v428_v39 }
 0xe2d   :  { %v430_v41 = vmul.f32 %v632_v38, %v429_v40 }
 0xe2f   :  { %v431_v42 = vadd.f32 %v632_v38, %v430_v41 }
 0xe31   :  { %v435_v45 = vsel %vm434_vm12, %v632_v38, %v431_v42 }
 0xe32   :  { %v440_v48 = vsel %vm437_vm13, %v439_v46, %v435_v45 }
 0xe33   :  { %v443_v50 = vmul.f32 %v440_v48, %v389_v26 }
 0xe90   :  { %v446_v47 = vpop.permute.xlu0 %445 }
 0xe91   :  { %v448_v49 = vmul.f32 %v446_v47, %v440_v48 }
 0xe93   :  { %450 = vrot.lane.b32.xlu1 %v448_v49, %s645_s16 }
 0xf05   :  { %v451_v51 = vpop.permute.xlu1 %450 }
 0xf06   :  { %v453_v52 = vadd.f32 %v451_v51, %v443_v50 }
 0xf08   :  { %633 = vtanh.f32 %v453_v52 }
 0xf0e   :  { %v634_v53 = vpop.eup %633 }
 0xf0f   :  { %456 = vrot.lane.b32.xlu2 %v634_v53, %s645_s16 }
 0xf69   :  { %v457_v54 = vpop.permute.xlu2 %456 }
 0xf6a   :  { %v459_v55 = vmul.f32 %v457_v54, %v440_v48 }
 0xf6c   :  { %462 = vrot.lane.b32.xlu0 %v459_v55, %s646_s17 }
 0xfde   :  { %v463_v56 = vpop.permute.xlu0 %462 }
 0xfdf   :  { %571 = vmatmul.msk.f32.vlgmr.msrb.gmra.mxu3 %vm14_vm4, %v463_v56 }
0x1062   :  { %v483_v58 = vpop.f32.mrf.mxu3 }
0x1063   :  { %v486_v59 = vadd.f32 %v483_v58, %v460_v57 }
0x1065   :  { %635 = vtanh.f32 %v486_v59  ;;  %v572_v61 = vmul.f32 -1.442695, %v486_v59 }
0x1067   :  { %637 = vpow2.f32 %v572_v61 }
0x106b   :  { %v636_v60 = vpop.eup %635 }
0x106c   :  { %509 = vrot.lane.b32.xlu1 %v636_v60, %s644_s15 }
0x106d   :  { %v638_v62 = vpop.eup %637 }
0x106e   :  { %v490_v63 = vadd.f32 1.0, %v638_v62 }
0x1070   :  { %639 = vrcp.f32 %v490_v63  ;;  %v502_v5 = vand.u32 2147483648, %v490_v63  ;;  %vm496_vm15 = vweird.f32 %v490_v63  ;;  %v500_v6 = vand.u32 2147483647, %v490_v63 }
0x1072   :  { %v503_v8 = vor.u32 1.1754944e-38, %v502_v5  ;;  %vm501_vm1 = vcmp.eq.f32.partialorder %v500_v6, 8.507059e+37 }
0x1076   :  { %v640_v0 = vpop.eup %639 }
0x1077   :  { %v492_v1 = vmul.f32 %v640_v0, %v490_v63  ;;  %vm497_vm14 = vweird.f32 %v640_v0 }
0x1078   :  { %vm498_vm0 = vmor %vm496_vm15, %vm497_vm14 }
0x1079   :  { %v493_v2 = vsub.f32 1.0, %v492_v1 }
0x107b   :  { %v494_v3 = vmul.f32 %v640_v0, %v493_v2 }
0x107d   :  { %v495_v4 = vadd.f32 %v640_v0, %v494_v3 }
0x107f   :  { %v499_v7 = vsel %vm498_vm0, %v640_v0, %v495_v4 }
0x1080   :  { %v504_v10 = vsel %vm501_vm1, %v503_v8, %v499_v7 }
0x1081   :  { %v507_v12 = vmul.f32 %v504_v10, %v453_v52 }
0x10de   :  { %v510_v9 = vpop.permute.xlu1 %509 }
0x10df   :  { %v512_v11 = vmul.f32 %v510_v9, %v504_v10 }
0x10e1   :  { %514 = vrot.lane.b32.xlu2 %v512_v11, %s645_s16 }
0x113b   :  { %v515_v13 = vpop.permute.xlu2 %514 }
0x113c   :  { %v517_v14 = vadd.f32 %v515_v13, %v507_v12 }
0x113e   :  { %641 = vtanh.f32 %v517_v14 }
0x1144   :  { %v642_v15 = vpop.eup %641 }
0x1145   :  { %520 = vrot.lane.b32.xlu0 %v642_v15, %s645_s16 }
0x11b7   :  { %v521_v18 = vpop.permute.xlu0 %520 }
0x11b8   :  { %v523_v19 = vmul.f32 %v521_v18, %v504_v10 }
0x11ba   :  { %529 = vrot.lane.b32.xlu1 %v523_v19, %s646_s17 }
0x122c   :  { %v530_v20 = vpop.permute.xlu1 %529 }
0x122d   :  { %573 = vmatmul.msk.f32.vlgmr.msra.gmra.mxu0 %vm14_vm4, %v530_v20 }
0x12aa   :  { %v550_v22 = vpop.f32.mrf.mxu0 }
0x12ab   :  { %v551_v23 = vadd.f32 %v578_v21, %v550_v22 }
0x12ad   :  { %553 = vst [vmem:[%s746_s2] sm:$0xff] %v551_v23 }

</bundles_post_ra>
